<compile_context>
chip_gen: v7x
topology: tpu7x:2x2x1
jax: 0.10.0
libtpu: 0.0.40
codegen_flags: <defaults>
</compile_context>

<pallas_src>
import jax
import jax.numpy as jnp
from jax.experimental import pallas as pl
from jax.experimental.pallas import tpu as pltpu

LOG_STD_MAX = 2.0
LOG_STD_MIN = -5.0
_A = 0.5 * (LOG_STD_MAX - LOG_STD_MIN)   # 3.5
_C = LOG_STD_MIN + _A                    # -1.5

# Single-tile (gridless) working set at this B stays well under v5e's 16 MiB
# default scoped-VMEM limit (h activations are the biggest term: B*256*4 B).
_GRIDLESS_MAX_B = 2048


# ----------------------------------------------------------------------------
# Kernel
# ----------------------------------------------------------------------------

def actor_kernel(x_ref, w1_ref, b1_ref, w2_ref, b2_ref, wh_ref, bh_ref,
                 mask_ref, out_ref):
    # Layer 1: Linear(obs_dim, 256) + ReLU.  x arrives pre-cast to bf16 from
    # the wrapper; MXU accumulates in f32 via preferred_element_type.
    h = jnp.dot(x_ref[...], w1_ref[...],
                preferred_element_type=jnp.float32) + b1_ref[...]
    h = jnp.maximum(h, 0.0)

    # Layer 2: Linear(256, 256) + ReLU.
    h = jnp.dot(h.astype(jnp.bfloat16), w2_ref[...],
                preferred_element_type=jnp.float32) + b2_ref[...]
    h = jnp.maximum(h, 0.0)

    # Fused heads in ONE lane-dense MXU launch:
    #   cols [0, act_dim)          -> mean     (identity)
    #   cols [act_dim, 2*act_dim)  -> log_std  (A*tanh(z) + C)
    #   cols >= 2*act_dim          -> zero padding (discarded by wrapper)
    head = jnp.dot(h.astype(jnp.bfloat16), wh_ref[...],
                   preferred_element_type=jnp.float32) + bh_ref[...]
    # Resident (1, head_pad) mask replaces per-step iota + 2 cmps + and.
    out = jnp.where(mask_ref[...] != 0.0, _A * jnp.tanh(head) + _C, head)
    out_ref[...] = out.astype(out_ref.dtype)


# ----------------------------------------------------------------------------
# Parameter packing and tiling policy
# ----------------------------------------------------------------------------

def pack_params(params):
    """Pack / cast raw (f32, per-head) params into kernel-friendly form."""
    act_dim = params["wm"].shape[1]
    hidden = params["wm"].shape[0]
    # Keep head_pad at exactly one 128-lane vreg unless act_dim forces more
    # (bounds wasted tanh/EUP work, matters most on v5e).
    head_pad = max(128, ((2 * act_dim + 127) // 128) * 128)

    wh = jnp.zeros((hidden, head_pad), jnp.float32)
    wh = wh.at[:, :act_dim].set(params["wm"])
    wh = wh.at[:, act_dim:2 * act_dim].set(params["ws"])
    bh = jnp.zeros((1, head_pad), jnp.float32)
    bh = bh.at[:, :act_dim].set(params["bm"])
    bh = bh.at[:, act_dim:2 * act_dim].set(params["bs"])
    mask = jnp.zeros((1, head_pad), jnp.float32)
    mask = mask.at[:, act_dim:2 * act_dim].set(1.0)

    return {
        "w1": params["w1"].astype(jnp.bfloat16),
        "b1": params["b1"],                       # biases stay f32
        "w2": params["w2"].astype(jnp.bfloat16),
        "b2": params["b2"],
        "wh": wh.astype(jnp.bfloat16),
        "bh": bh,
        "mask": mask,                             # 1.0 on log_std columns
    }


def _num_tensorcores():
    """Best-effort TensorCore-per-chip count (v7x = 2, v5e/v6e = 1)."""
    try:
        dev = jax.devices()[0]
        kind = str(getattr(dev, "device_kind", "")).lower()
        if "v7" in kind:
            return 2
        nc = getattr(dev, "num_cores", None)
        if isinstance(nc, int) and nc >= 1:
            return nc
    except Exception:
        pass
    return 1


def _select_tiling(batch, num_tc):
    """Return batch-tile size, or None for the gridless (single-tile) path."""
    cands = (4096, 2048, 1024, 512, 256, 128)
    if num_tc >= 2:
        # Need an even grid >= 2 so the "parallel" batch axis splits evenly
        # across both TensorCores (grid=1 or odd leaves a core idle/imbalanced).
        for c in cands:
            g = batch // c
            if batch % c == 0 and g >= 2 and g % 2 == 0:
                return c
        for c in cands:
            if batch % c == 0 and (batch // c) >= 2:
                return c
        return None
    # Single TensorCore: every grid step is pure overhead with zero
    # parallelism gain -> gridless while the tile fits VMEM comfortably,
    # otherwise the biggest dividing tile (fewest steps).
    if batch <= _GRIDLESS_MAX_B:
        return None
    for c in cands:
        if batch % c == 0:
            return c
    return None


# ----------------------------------------------------------------------------
# Forward wrappers
# ----------------------------------------------------------------------------

def actor_forward_packed(x, pk, out_dtype=jnp.bfloat16):
    """Fused forward.  Returns the packed (B, head_pad) head slab:
    cols [0, act_dim) = mean, [act_dim, 2*act_dim) = log_std, rest padding.
    Downstream SAC sampling can consume this slab directly (avoids re-reading
    the wide slab just to slice out 2*act_dim useful lanes)."""
    B, obs_dim = x.shape
    hidden = pk["w1"].shape[1]
    head_pad = pk["wh"].shape[1]

    x = x.astype(jnp.bfloat16)   # halve the only streamed input's DMA bytes
    args = (x, pk["w1"], pk["b1"], pk["w2"], pk["b2"],
            pk["wh"], pk["bh"], pk["mask"])
    out_shape = jax.ShapeDtypeStruct((B, head_pad), out_dtype)

    tb = _select_tiling(B, _num_tensorcores())

    if tb is None:
        # Gridless single-tile path (small / moderate B, single-TC chips).
        kwargs = {}
        if B > _GRIDLESS_MAX_B:
            kwargs["compiler_params"] = pltpu.CompilerParams(
                vmem_limit_bytes=48 << 20)
        return pl.pallas_call(actor_kernel, out_shape=out_shape, **kwargs)(*args)

    grid_spec = pltpu.PrefetchScalarGridSpec(
        num_scalar_prefetch=0,
        grid=(B // tb,),
        in_specs=[
            pl.BlockSpec((tb, obs_dim), lambda i: (i, 0)),        # x tile (streamed)
            pl.BlockSpec((obs_dim, hidden), lambda i: (0, 0)),    # w1 (VMEM resident)
            pl.BlockSpec((1, hidden), lambda i: (0, 0)),          # b1
            pl.BlockSpec((hidden, hidden), lambda i: (0, 0)),     # w2
            pl.BlockSpec((1, hidden), lambda i: (0, 0)),          # b2
            pl.BlockSpec((hidden, head_pad), lambda i: (0, 0)),   # wh (fused heads)
            pl.BlockSpec((1, head_pad), lambda i: (0, 0)),        # bh
            pl.BlockSpec((1, head_pad), lambda i: (0, 0)),        # log_std col mask
        ],
        out_specs=pl.BlockSpec((tb, head_pad), lambda i: (i, 0)),
    )
    return pl.pallas_call(
        actor_kernel,
        out_shape=out_shape,
        grid_spec=grid_spec,
        compiler_params=pltpu.CompilerParams(
            dimension_semantics=("parallel",),
            # Only the big-tile configs need more than v5e's 16 MiB default;
            # 32 MiB matches the v6e/v7x default and is far under physical.
            vmem_limit_bytes=(32 << 20) if tb >= 2048 else None),
    )(*args)


def actor_forward(x, pk, act_dim, out_dtype=jnp.bfloat16):
    """Spec-shaped forward: returns (mean, log_std), both (B, act_dim)."""
    out = actor_forward_packed(x, pk, out_dtype=out_dtype)
    mean = out[:, :act_dim]
    log_std = out[:, act_dim:2 * act_dim]
    return mean, log_std


# ----------------------------------------------------------------------------
# Init + references (pure JAX) for correctness checking.
# ----------------------------------------------------------------------------

def _orthogonal(key, shape, gain):
    """Orthogonal init matching torch.nn.init.orthogonal_ semantics."""
    rows, cols = shape
    big, small = (rows, cols) if rows >= cols else (cols, rows)
    a = jax.random.normal(key, (big, small), dtype=jnp.float32)
    q, r = jnp.linalg.qr(a)
    q = q * jnp.sign(jnp.diagonal(r))
    if rows < cols:
        q = q.T
    return gain * q


def init_params(key, obs_dim, act_dim, hidden=256):
    k1, k2, k3, k4 = jax.random.split(key, 4)
    sqrt2 = float(jnp.sqrt(2.0))
    # Stored as (in, out) so the kernel computes x @ W (PyTorch W transposed).
    return {
        "w1": _orthogonal(k1, (obs_dim, hidden), sqrt2),
        "b1": jnp.zeros((1, hidden), jnp.float32),
        "w2": _orthogonal(k2, (hidden, hidden), sqrt2),
        "b2": jnp.zeros((1, hidden), jnp.float32),
        "wm": _orthogonal(k3, (hidden, act_dim), 0.01),
        "bm": jnp.zeros((1, act_dim), jnp.float32),
        "ws": _orthogonal(k4, (hidden, act_dim), 0.01),
        "bs": jnp.zeros((1, act_dim), jnp.float32),
    }


def actor_forward_ref_f32(x, p):
    """Full-precision spec reference (PyTorch math, f32 weights)."""
    h = jax.nn.relu(x @ p["w1"] + p["b1"])
    h = jax.nn.relu(h @ p["w2"] + p["b2"])
    mean = h @ p["wm"] + p["bm"]
    log_std = jnp.tanh(h @ p["ws"] + p["bs"])
    log_std = LOG_STD_MIN + 0.5 * (LOG_STD_MAX - LOG_STD_MIN) * (log_std + 1.0)
    return mean, log_std


def actor_forward_ref_bf16(x, pk, act_dim):
    """Reference matching the kernel's bf16-MXU / f32-accumulate math."""
    xb = x.astype(jnp.bfloat16)
    h = jnp.dot(xb, pk["w1"], preferred_element_type=jnp.float32) + pk["b1"]
    h = jnp.maximum(h, 0.0)
    h = jnp.dot(h.astype(jnp.bfloat16), pk["w2"],
                preferred_element_type=jnp.float32) + pk["b2"]
    h = jnp.maximum(h, 0.0)
    head = jnp.dot(h.astype(jnp.bfloat16), pk["wh"],
                   preferred_element_type=jnp.float32) + pk["bh"]
    mean = head[:, :act_dim]
    log_std = _A * jnp.tanh(head[:, act_dim:2 * act_dim]) + _C
    return mean, log_std


if __name__ == "__main__":
    key = jax.random.PRNGKey(0)
    kx, kp, kx2 = jax.random.split(key, 3)

    B, OBS_DIM, ACT_DIM = 8, 16, 4  # small env-like shapes
    x = jax.random.normal(kx, (B, OBS_DIM), dtype=jnp.float32)
    params = init_params(kp, OBS_DIM, ACT_DIM)
    packed = pack_params(params)

    # --- small-batch (gridless) path ---
    mean, log_std = actor_forward(x, packed, ACT_DIM)
    jax.block_until_ready((mean, log_std))
    assert mean.shape == (B, ACT_DIM) and log_std.shape == (B, ACT_DIM)

    mean32 = mean.astype(jnp.float32)
    log_std32 = log_std.astype(jnp.float32)

    mean_r, log_std_r = actor_forward_ref_bf16(x, packed, ACT_DIM)
    assert jnp.allclose(mean32, mean_r, atol=1e-2, rtol=1e-2)
    assert jnp.allclose(log_std32, log_std_r, atol=1e-2, rtol=1e-2)

    mean_f, log_std_f = actor_forward_ref_f32(x, params)
    assert jnp.allclose(mean32, mean_f, atol=5e-2, rtol=5e-2)
    assert jnp.allclose(log_std32, log_std_f, atol=5e-2, rtol=5e-2)

    # --- large-batch path (tiled batch grid or single big tile, per chip) ---
    B2 = 4096
    x2 = jax.random.normal(kx2, (B2, OBS_DIM), dtype=jnp.float32)
    mean2, log_std2 = actor_forward(x2, packed, ACT_DIM)
    jax.block_until_ready((mean2, log_std2))
    assert mean2.shape == (B2, ACT_DIM) and log_std2.shape == (B2, ACT_DIM)
    mean2_r, log_std2_r = actor_forward_ref_bf16(x2, packed, ACT_DIM)
    assert jnp.allclose(mean2.astype(jnp.float32), mean2_r, atol=1e-2, rtol=1e-2)
    assert jnp.allclose(log_std2.astype(jnp.float32), log_std2_r, atol=1e-2, rtol=1e-2)

    # TODO(synk): at tiny B (~8) fixed launch overhead dominates; the real fix is
    # fusing SAC's get_action sampling (exp/rsample/tanh-squash) into this kernel.

    print("KERNEL_OK")
</pallas_src>

<mosaic_0001>
module attributes {stable_mosaic.version = 11 : i64} {
  func.func @actor_kernel(%arg0: memref<8x16xbf16, #tpu.memory_space<vmem>>, %arg1: memref<16x256xbf16, #tpu.memory_space<vmem>>, %arg2: memref<1x256xf32, #tpu.memory_space<vmem>>, %arg3: memref<256x256xbf16, #tpu.memory_space<vmem>>, %arg4: memref<1x256xf32, #tpu.memory_space<vmem>>, %arg5: memref<256x128xbf16, #tpu.memory_space<vmem>>, %arg6: memref<1x128xf32, #tpu.memory_space<vmem>>, %arg7: memref<1x128xf32, #tpu.memory_space<vmem>>, %arg8: memref<8x128xbf16, #tpu.memory_space<vmem>>) attributes {dimension_semantics = [], scalar_prefetch = 0 : i64, scratch_operands = 0 : i64, tpu.core_type = #tpu.core_type<tc>} {
    %c0 = arith.constant 0 : index
    %c0_0 = arith.constant 0 : index
    %0 = vector.load %arg0[%c0, %c0_0] : memref<8x16xbf16, #tpu.memory_space<vmem>>, vector<8x16xbf16>
    %c0_1 = arith.constant 0 : index
    %c0_2 = arith.constant 0 : index
    %1 = vector.load %arg1[%c0_1, %c0_2] : memref<16x256xbf16, #tpu.memory_space<vmem>>, vector<16x256xbf16>
    %cst = arith.constant dense<0.000000e+00> : vector<8x256xf32>
    %2 = tpu.matmul %0, %1, %cst {dimension_numbers = #tpu.dot_dimension_numbers<[1], [0], [0], [1], [0, 0, 1, 1], [], []>} : vector<8x16xbf16>, vector<16x256xbf16>, vector<8x256xf32> -> vector<8x256xf32>
    %c0_3 = arith.constant 0 : index
    %c0_4 = arith.constant 0 : index
    %3 = vector.load %arg2[%c0_3, %c0_4] : memref<1x256xf32, #tpu.memory_space<vmem>>, vector<1x256xf32>
    %4 = vector.broadcast %3 : vector<1x256xf32> to vector<8x256xf32>
    %5 = arith.addf %2, %4 : vector<8x256xf32>
    %cst_5 = arith.constant 0.000000e+00 : f32
    %6 = vector.broadcast %cst_5 : f32 to vector<8x256xf32>
    %7 = arith.maximumf %5, %6 : vector<8x256xf32>
    %8 = arith.truncf %7 : vector<8x256xf32> to vector<8x256xbf16>
    %c0_6 = arith.constant 0 : index
    %c0_7 = arith.constant 0 : index
    %9 = vector.load %arg3[%c0_6, %c0_7] : memref<256x256xbf16, #tpu.memory_space<vmem>>, vector<256x256xbf16>
    %cst_8 = arith.constant dense<0.000000e+00> : vector<8x256xf32>
    %10 = tpu.matmul %8, %9, %cst_8 {dimension_numbers = #tpu.dot_dimension_numbers<[1], [0], [0], [1], [0, 0, 1, 1], [], []>} : vector<8x256xbf16>, vector<256x256xbf16>, vector<8x256xf32> -> vector<8x256xf32>
    %c0_9 = arith.constant 0 : index
    %c0_10 = arith.constant 0 : index
    %11 = vector.load %arg4[%c0_9, %c0_10] : memref<1x256xf32, #tpu.memory_space<vmem>>, vector<1x256xf32>
    %12 = vector.broadcast %11 : vector<1x256xf32> to vector<8x256xf32>
    %13 = arith.addf %10, %12 : vector<8x256xf32>
    %cst_11 = arith.constant 0.000000e+00 : f32
    %14 = vector.broadcast %cst_11 : f32 to vector<8x256xf32>
    %15 = arith.maximumf %13, %14 : vector<8x256xf32>
    %16 = arith.truncf %15 : vector<8x256xf32> to vector<8x256xbf16>
    %c0_12 = arith.constant 0 : index
    %c0_13 = arith.constant 0 : index
    %17 = vector.load %arg5[%c0_12, %c0_13] : memref<256x128xbf16, #tpu.memory_space<vmem>>, vector<256x128xbf16>
    %cst_14 = arith.constant dense<0.000000e+00> : vector<8x128xf32>
    %18 = tpu.matmul %16, %17, %cst_14 {dimension_numbers = #tpu.dot_dimension_numbers<[1], [0], [0], [1], [0, 0, 1, 1], [], []>} : vector<8x256xbf16>, vector<256x128xbf16>, vector<8x128xf32> -> vector<8x128xf32>
    %c0_15 = arith.constant 0 : index
    %c0_16 = arith.constant 0 : index
    %19 = vector.load %arg6[%c0_15, %c0_16] : memref<1x128xf32, #tpu.memory_space<vmem>>, vector<1x128xf32>
    %20 = vector.broadcast %19 : vector<1x128xf32> to vector<8x128xf32>
    %21 = arith.addf %18, %20 : vector<8x128xf32>
    %c0_17 = arith.constant 0 : index
    %c0_18 = arith.constant 0 : index
    %22 = vector.load %arg7[%c0_17, %c0_18] : memref<1x128xf32, #tpu.memory_space<vmem>>, vector<1x128xf32>
    %cst_19 = arith.constant 0.000000e+00 : f32
    %23 = vector.broadcast %cst_19 : f32 to vector<1x128xf32>
    %24 = arith.cmpf one, %22, %23 : vector<1x128xf32>
    %25 = math.tanh %21 : vector<8x128xf32>
    %cst_20 = arith.constant 3.500000e+00 : f32
    %26 = vector.broadcast %cst_20 : f32 to vector<8x128xf32>
    %27 = arith.mulf %26, %25 : vector<8x128xf32>
    %cst_21 = arith.constant -1.500000e+00 : f32
    %28 = vector.broadcast %cst_21 : f32 to vector<8x128xf32>
    %29 = arith.addf %27, %28 : vector<8x128xf32>
    %30 = vector.shape_cast %24 : vector<1x128xi1> to vector<1x128xi1>
    %31 = vector.broadcast %30 : vector<1x128xi1> to vector<8x128xi1>
    %32 = arith.select %31, %29, %21 : vector<8x128xi1>, vector<8x128xf32>
    %33 = arith.truncf %32 : vector<8x128xf32> to vector<8x128xbf16>
    %c0_22 = arith.constant 0 : index
    %c0_23 = arith.constant 0 : index
    %34 = vector.load %arg8[%c0_22, %c0_23] : memref<8x128xbf16, #tpu.memory_space<vmem>>, vector<8x128xbf16>
    tpu.vector_store %arg8[%c0_22, %c0_23], %33 {strides = array<i32>} : memref<8x128xbf16, #tpu.memory_space<vmem>>, vector<8x128xbf16>,
    return
  }
}

</mosaic_0001>

<bundles_post_ra>
// kernel: tpu_custom_call.1
= control target key start
LH: loop header
LB: loop body
LE: loop exit
PB: predicated region body
PF: predicated region fallthrough
CT: control target
= control target key end

     0   :  { %13 = vsyncpa [#allocation3], 0  ;;  %s1019_s0 = inlined_call_operand.hbm [shape: bf16[8,16], index: 0, kind: input, shape index: {}]   ;;  %s1020_s1 = inlined_call_operand.hbm [shape: bf16[16,256], index: 1, kind: input, shape index: {}]   ;;  %s1021_s2 = inlined_call_operand.vmem [shape: f32[1,256], index: 2, kind: input, shape index: {}]   ;;  %s1022_s3 = inlined_call_operand.hbm [shape: bf16[256,256], index: 3, kind: input, shape index: {}]   ;;  %s1023_s4 = inlined_call_operand.vmem [shape: f32[1,256], index: 4, kind: input, shape index: {}]   ;;  %s1024_s5 = inlined_call_operand.hbm [shape: bf16[256,128], index: 5, kind: input, shape index: {}]   ;;  %s1025_s6 = inlined_call_operand.vmem [shape: f32[1,128], index: 6, kind: input, shape index: {}]   ;;  %s1026_s7 = inlined_call_operand.vmem [shape: f32[1,128], index: 7, kind: input, shape index: {}]   ;;  %s1027_s8 = inlined_call_operand.hbm [shape: bf16[8,128], index: 8, kind: output, shape index: {}]  }
   0x1   :  { %14 = vsyncpa [#allocation6], 0 }
   0x2   :  { %15 = vsyncpa [#allocation9], 0 }
   0x3   :  { %16 = vsyncpa [#allocation4], 0  ;;  %s884_s27 = smov [#allocation5]   ;;  %s766_s9 = scalar_lea.hbm %s1020_s1, 256 }
   0x4   :  { %s32_s28 = sshll.u32 %s884_s27, 4  ;;  %p767_p0 = scmp.ne.s32.totalorder %s1020_s1, %s766_s9  ;;  %s33_s28 = int_to_ptr.vmem [resolvable:$true] %s32_s28 }
   0x5   :  { %p770_p1 = scmp.lt.u32.totalorder %s766_s9, %s1020_s1 }
   0x7   :  { %p772_p2 = pnand %p770_p1, %p767_p0 }
   0x9   :  { %775 = shalt.err (!%p772_p2)
}
   0xa   :  { %s776_s14 = scalar_lea.vmem %s33_s28, 256  ;;  %p781_p4 = scmp.lt.s32.totalorder %s33_s28, %s33_s28 }
   0xb   :  { %p777_p3 = scmp.ne.s32.totalorder %s33_s28, %s776_s14  ;;  %p782_p5 = scmp.lt.s32.totalorder %s776_s14, %s776_s14 }
   0xd   :  { %p783_p6 = por %p782_p5, %p781_p4 }
   0xf   :  { %p784_p7 = pnand %p783_p6, %p777_p3 }
  0x11   :  { %787 = shalt.err (!%p784_p7)
}
  0x12   :  { %s885_s15 = smov 128   ;;  %s886_s16 = smov 8  }
  0x13   :  { %38 = dma.hbm_to_vmem [thread:$0]  %s1020_s1, 256, %s33_s28, [#allocation6], %s885_s15, %s885_s15, %s886_s16  }
  0x14   :  { %s887_s19 = smov [#allocation2]   ;;  %s888_s21 = smov [#allocation7]  }
  0x15   :  { %s23_s20 = sshll.u32 %s887_s19, 4  ;;  %s46_s22 = sshll.u32 %s888_s21, 4  ;;  %s24_s20 = int_to_ptr.vmem [resolvable:$true] %s23_s20  ;;  %s47_s22 = int_to_ptr.vmem [resolvable:$true] %s46_s22 }
  0x16   :  { %s788_s25 = scalar_lea.hbm %s1019_s0, 64 }
  0x17   :  { %p789_p8 = scmp.ne.s32.totalorder %s1019_s0, %s788_s25  ;;  %p792_p9 = scmp.lt.u32.totalorder %s788_s25, %s1019_s0 }
  0x19   :  { %p794_p10 = pnand %p792_p9, %p789_p8 }
  0x1b   :  { %797 = shalt.err (!%p794_p10)
}
  0x1c   :  { %s798_s1 = scalar_lea.vmem %s24_s20, 64  ;;  %p803_p12 = scmp.lt.s32.totalorder %s24_s20, %s24_s20 }
  0x1d   :  { %p799_p11 = scmp.ne.s32.totalorder %s24_s20, %s798_s1  ;;  %p804_p13 = scmp.lt.s32.totalorder %s798_s1, %s798_s1 }
  0x1f   :  { %p805_p0 = por %p804_p13, %p803_p12 }
  0x21   :  { %p806_p1 = pnand %p805_p0, %p799_p11 }
  0x23   :  { %809 = shalt.err (!%p806_p1)
}
  0x24   :  { %26 = dma.hbm_to_vmem [thread:$0]  %s1019_s0, 64, %s24_s20, [#allocation3]  }
  0x25   :  { %s810_s12 = scalar_lea.hbm %s1022_s3, 4096 }
  0x26   :  { %p811_p2 = scmp.ne.s32.totalorder %s1022_s3, %s810_s12  ;;  %p814_p3 = scmp.lt.u32.totalorder %s810_s12, %s1022_s3 }
  0x28   :  { %p816_p4 = pnand %p814_p3, %p811_p2 }
  0x2a   :  { %819 = shalt.err (!%p816_p4)
}
  0x2b   :  { %s820_s19 = scalar_lea.vmem %s47_s22, 4096  ;;  %p825_p6 = scmp.lt.s32.totalorder %s47_s22, %s47_s22 }
  0x2c   :  { %p821_p5 = scmp.ne.s32.totalorder %s47_s22, %s820_s19  ;;  %p826_p7 = scmp.lt.s32.totalorder %s820_s19, %s820_s19 }
  0x2e   :  { %p827_p8 = por %p826_p7, %p825_p6 }
  0x30   :  { %p828_p9 = pnand %p827_p8, %p821_p5 }
  0x32   :  { %831 = shalt.err (!%p828_p9)
}
  0x33   :  { %52 = dma.hbm_to_vmem [thread:$0]  %s1022_s3, 4096, %s47_s22, [#allocation6], %s885_s15, %s885_s15, %s886_s16  }
  0x34   :  { %s889_s21 = smov [#allocation8]   ;;  %s832_s26 = scalar_lea.hbm %s1024_s5, 2048 }
  0x35   :  { %s60_s23 = sshll.u32 %s889_s21, 4  ;;  %p833_p10 = scmp.ne.s32.totalorder %s1024_s5, %s832_s26  ;;  %s61_s23 = int_to_ptr.vmem [resolvable:$true] %s60_s23 }
  0x36   :  { %p836_p11 = scmp.lt.u32.totalorder %s832_s26, %s1024_s5 }
  0x38   :  { %p838_p12 = pnand %p836_p11, %p833_p10 }
  0x3a   :  { %841 = shalt.err (!%p838_p12)
}
  0x3b   :  { %s842_s28 = scalar_lea.vmem %s61_s23, 2048  ;;  %p847_p0 = scmp.lt.s32.totalorder %s61_s23, %s61_s23 }
  0x3c   :  { %p843_p13 = scmp.ne.s32.totalorder %s61_s23, %s842_s28  ;;  %p848_p1 = scmp.lt.s32.totalorder %s842_s28, %s842_s28 }
  0x3e   :  { %p849_p2 = por %p848_p1, %p847_p0 }
  0x40   :  { %p850_p3 = pnand %p849_p2, %p843_p13 }
  0x42   :  { %853 = shalt.err (!%p850_p3)
}
  0x43   :  { %s890_s3 = smov 64   ;;  %s891_s15 = smov 4  }
  0x44   :  { %66 = dma.hbm_to_vmem [thread:$0]  %s1024_s5, 2048, %s61_s23, [#allocation9], %s890_s3, %s890_s3, %s891_s15  }
  0x45   :  { %876 = dma.done.wait [#allocation3], 64  }
  0x46   :  { %877 = vsyncadd [#allocation3], 4294967232 }
  0x47   :  { %878 = dma.done.wait [#allocation6], 4352  }
  0x48   :  { %879 = vsyncadd [#allocation6], 4294962944 }
  0x49   :  { %880 = dma.done.wait [#allocation9], 2048  }
  0x4a   :  { %881 = vsyncadd [#allocation9], 4294965248  ;;  %v892_v0 = vmov 0   ;;  %v697_v1 = vld [vmem:[#allocation5 + $0x4] ss:$8 sps:$4 sm:$0xff]   ;;  %vm109_vm0 = vcmask 130048   ;;  %v89_v48 = vlaneseq }
  0x4b   :  { %145 = vmatprep.mubr.bf16.mxu0 %v892_v0  ;;  %v699_v2 = vld [vmem:[#allocation5] ss:$8 sps:$4 sm:$0xff]   ;;  %v84_v3 = vld [vmem:[#allocation2] sm:$0xf]  ;;  %113 = vmatprep.subr.bf16.mxu0 %v697_v1  ;;  %v702_v5 = vld [vmem:[#allocation7] ss:$8 sps:$4 sm:$0xff]  }
  0x4c   :  { %v700_v4 = vld [vmem:[#allocation7 + $0x4] ss:$8 sps:$4 sm:$0xff]   ;;  %114 = vmatpush1.bf16.msra.mxu0 %v699_v2  ;;  %v703_v6 = vld [vmem:[#allocation7 + $0x14] ss:$8 sps:$4 sm:$0xff]   ;;  %v705_v7 = vld [vmem:[#allocation7 + $0x10] ss:$8 sps:$4 sm:$0xff]  }
  0x4d   :  { %362 = vmatprep.subr.bf16.mxu1 %v700_v4  ;;  %v706_v8 = vld [vmem:[#allocation7 + $0x24] ss:$8 sps:$4 sm:$0xff]   ;;  %v708_v9 = vld [vmem:[#allocation7 + $0x20] ss:$8 sps:$4 sm:$0xff]   ;;  %v709_v10 = vld [vmem:[#allocation7 + $0x34] ss:$8 sps:$4 sm:$0xff]  }
  0x4e   :  { %363 = vmatpush1.bf16.msra.mxu1 %v702_v5  ;;  %v711_v11 = vld [vmem:[#allocation7 + $0x30] ss:$8 sps:$4 sm:$0xff]   ;;  %v712_v12 = vld [vmem:[#allocation7 + $0x44] ss:$8 sps:$4 sm:$0xff]   ;;  %v714_v13 = vld [vmem:[#allocation7 + $0x40] ss:$8 sps:$4 sm:$0xff]  }
  0x4f   :  { %615 = vmatmul.mubr.msk.bf16.vlgmr.msra.gmra.mrb[0].mxu0 %vm109_vm0, %v84_v3  ;;  %364 = vmatprep.subr.bf16.mxu1 %v703_v6  ;;  %v715_v14 = vld [vmem:[#allocation7 + $0x54] ss:$8 sps:$4 sm:$0xff]   ;;  %v717_v15 = vld [vmem:[#allocation7 + $0x50] ss:$8 sps:$4 sm:$0xff]   ;;  %v718_v16 = vld [vmem:[#allocation7 + $0x64] ss:$8 sps:$4 sm:$0xff]  }
  0x50   :  { %v720_v17 = vld [vmem:[#allocation7 + $0x60] ss:$8 sps:$4 sm:$0xff]   ;;  %v721_v18 = vld [vmem:[#allocation7 + $0x74] ss:$8 sps:$4 sm:$0xff]   ;;  %v723_v19 = vld [vmem:[#allocation7 + $0x70] ss:$8 sps:$4 sm:$0xff]  }
  0x51   :  { %v724_v20 = vld [vmem:[#allocation7 + $0x84] ss:$8 sps:$4 sm:$0xff]   ;;  %v726_v21 = vld [vmem:[#allocation7 + $0x80] ss:$8 sps:$4 sm:$0xff]   ;;  %v727_v22 = vld [vmem:[#allocation7 + $0x94] ss:$8 sps:$4 sm:$0xff]  }
  0x52   :  { %365 = vmatpush1.bf16.msra.mxu1 %v705_v7  ;;  %v729_v23 = vld [vmem:[#allocation7 + $0x90] ss:$8 sps:$4 sm:$0xff]   ;;  %v730_v24 = vld [vmem:[#allocation7 + $0xa4] ss:$8 sps:$4 sm:$0xff]   ;;  %v732_v25 = vld [vmem:[#allocation7 + $0xa0] ss:$8 sps:$4 sm:$0xff]  }
  0x53   :  { %366 = vmatprep.subr.bf16.mxu1 %v706_v8  ;;  %v733_v26 = vld [vmem:[#allocation7 + $0xb4] ss:$8 sps:$4 sm:$0xff]   ;;  %v735_v27 = vld [vmem:[#allocation7 + $0xb0] ss:$8 sps:$4 sm:$0xff]   ;;  %v736_v28 = vld [vmem:[#allocation7 + $0xc4] ss:$8 sps:$4 sm:$0xff]  }
  0x54   :  { %v738_v29 = vld [vmem:[#allocation7 + $0xc0] ss:$8 sps:$4 sm:$0xff]   ;;  %v739_v30 = vld [vmem:[#allocation7 + $0xd4] ss:$8 sps:$4 sm:$0xff]   ;;  %v741_v31 = vld [vmem:[#allocation7 + $0xd0] ss:$8 sps:$4 sm:$0xff]  }
  0x55   :  { %v742_v32 = vld [vmem:[#allocation7 + $0xe4] ss:$8 sps:$4 sm:$0xff]   ;;  %v744_v33 = vld [vmem:[#allocation7 + $0xe0] ss:$8 sps:$4 sm:$0xff]   ;;  %v745_v34 = vld [vmem:[#allocation7 + $0xf4] ss:$8 sps:$4 sm:$0xff]  }
  0x56   :  { %367 = vmatpush1.bf16.msra.mxu1 %v708_v9  ;;  %v747_v35 = vld [vmem:[#allocation7 + $0xf0] ss:$8 sps:$4 sm:$0xff]   ;;  %v748_v36 = vld [vmem:[#allocation8 + $0x40] sm:$0xff]   ;;  %v750_v38 = vld [vmem:[#allocation8 + $0x48] sm:$0xff]   ;;  %v90_v49 = vshrl.u32 %v89_v48, 7  ;;  %s893_s14 = smov [#allocation10]  }
  0x57   :  { %368 = vmatprep.subr.bf16.mxu1 %v709_v10  ;;  %v749_v37 = vld [vmem:[#allocation8] sm:$0xff]   ;;  %665 = vmatprep.subr.bf16.mxu0 %v748_v36  ;;  %v751_v39 = vld [vmem:[#allocation8 + $0x8] sm:$0xff]   ;;  %v752_v40 = vld [vmem:[#allocation8 + $0x50] sm:$0xff]  }
  0x58   :  { %666 = vmatpush3.bf16.msra.mxu0 %v749_v37  ;;  %v753_v41 = vld [vmem:[#allocation8 + $0x10] sm:$0xff]   ;;  %v754_v42 = vld [vmem:[#allocation8 + $0x58] sm:$0xff]   ;;  %v756_v44 = vld [vmem:[#allocation8 + $0x60] sm:$0xff]   ;;  %v91_v50 = vsub.s32 0, %v90_v49  ;;  %v95_v52 = vsub.s32 1, %v90_v49 }
  0x59   :  { %667 = vmatprep.subr.bf16.mxu0 %v750_v38  ;;  %v755_v43 = vld [vmem:[#allocation8 + $0x18] sm:$0xff]   ;;  %v757_v45 = vld [vmem:[#allocation8 + $0x20] sm:$0xff]   ;;  %v758_v46 = vld [vmem:[#allocation8 + $0x68] sm:$0xff]  }
  0x5a   :  { %369 = vmatpush1.bf16.msra.mxu1 %v711_v11  ;;  %v759_v47 = vld [vmem:[#allocation8 + $0x28] sm:$0xff]   ;;  %v760_v2 = vld [vmem:[#allocation8 + $0x70] sm:$0xff]   ;;  %v762_v4 = vld [vmem:[#allocation8 + $0x78] sm:$0xff]  }
  0x5b   :  { %370 = vmatprep.subr.bf16.mxu1 %v712_v12  ;;  %v87_v51 = vld [vmem:[%s1021_s2] sm:$0x3]  ;;  %v761_v3 = vld [vmem:[#allocation8 + $0x30] sm:$0xff]   ;;  %v763_v5 = vld [vmem:[#allocation8 + $0x38] sm:$0xff]  }
  0x5c   :  { %668 = vmatpush3.bf16.msra.mxu0 %v751_v39  ;;  %v92_v53 = vrot.slane %v87_v51, %v91_v50  ;;  %v96_v54 = vrot.slane %v87_v51, %v95_v52  ;;  %v190_v6 = vld [vmem:[%s1023_s4] sm:$0x3] }
  0x5d   :  { %669 = vmatprep.subr.bf16.mxu0 %v752_v40  ;;  %v195_v7 = vrot.slane %v190_v6, %v91_v50  ;;  %v199_v8 = vrot.slane %v190_v6, %v95_v52 }
  0x5e   :  { %371 = vmatpush1.bf16.msra.mxu1 %v714_v13 }
  0x5f   :  { %372 = vmatprep.subr.bf16.mxu1 %v715_v14 }
  0x60   :  { %670 = vmatpush3.bf16.msra.mxu0 %v753_v41 }
  0x61   :  { %671 = vmatprep.subr.bf16.mxu0 %v754_v42 }
  0x62   :  { %373 = vmatpush1.bf16.msra.mxu1 %v717_v15 }
  0x63   :  { %374 = vmatprep.subr.bf16.mxu1 %v718_v16 }
  0x64   :  { %672 = vmatpush3.bf16.msra.mxu0 %v755_v43 }
  0x65   :  { %673 = vmatprep.subr.bf16.mxu0 %v756_v44 }
  0x66   :  { %375 = vmatpush1.bf16.msra.mxu1 %v720_v17 }
  0x67   :  { %376 = vmatprep.subr.bf16.mxu1 %v721_v18 }
  0x68   :  { %674 = vmatpush3.bf16.msra.mxu0 %v757_v45 }
  0x69   :  { %675 = vmatprep.subr.bf16.mxu0 %v758_v46 }
  0x6a   :  { %377 = vmatpush1.bf16.msra.mxu1 %v723_v19 }
  0x6b   :  { %378 = vmatprep.subr.bf16.mxu1 %v724_v20  ;;  %v648_v20 = vld [vmem:[%s1025_s6] ss:$0 sm:$0xff]  ;;  %s602_s6 = sshll.u32 %s893_s14, 4  ;;  %s603_s6 = int_to_ptr.vmem [resolvable:$true] %s602_s6 }
  0x6c   :  { %676 = vmatpush3.bf16.msra.mxu0 %v759_v47  ;;  %s854_s17 = scalar_lea.vmem %s603_s6, 64  ;;  %p859_p5 = scmp.lt.s32.totalorder %s603_s6, %s603_s6 }
  0x6d   :  { %677 = vmatprep.subr.bf16.mxu0 %v760_v2  ;;  %p855_p4 = scmp.ne.s32.totalorder %s603_s6, %s854_s17  ;;  %p860_p6 = scmp.lt.s32.totalorder %s854_s17, %s854_s17 }
  0x6e   :  { %379 = vmatpush1.bf16.msra.mxu1 %v726_v21 }
  0x6f   :  { %380 = vmatprep.subr.bf16.mxu1 %v727_v22  ;;  %p861_p7 = por %p860_p6, %p859_p5 }
  0x70   :  { %678 = vmatpush3.bf16.msra.mxu0 %v761_v3 }
  0x71   :  { %679 = vmatprep.subr.bf16.mxu0 %v762_v4  ;;  %p862_p8 = pnand %p861_p7, %p855_p4 }
  0x72   :  { %381 = vmatpush1.bf16.msra.mxu1 %v729_v23 }
  0x73   :  { %382 = vmatprep.subr.bf16.mxu1 %v730_v24 }
  0x74   :  { %680 = vmatpush3.bf16.msra.mxu0 %v763_v5 }
  0x76   :  { %383 = vmatpush1.bf16.msra.mxu1 %v732_v25 }
  0x77   :  { %384 = vmatprep.subr.bf16.mxu1 %v733_v26  ;;  %v582_v26 = vld [vmem:[%s1026_s7] sm:$0x1] }
  0x78   :  { %vm583_vm1 = vcmp.ne.f32.partialorder %v582_v26, 0.0 }
  0x7a   :  { %385 = vmatpush1.bf16.msra.mxu1 %v735_v27  ;;  %v587_v27 = vsel %vm583_vm1, 1, %v892_v0 }
  0x7b   :  { %386 = vmatprep.subr.bf16.mxu1 %v736_v28  ;;  %v591_v28 = vrot.slane %v587_v27, %v91_v50 }
  0x7d   :  { %vm592_vm2 = vcmp.eq.s32.totalorder %v591_v28, 1 }
  0x7e   :  { %387 = vmatpush1.bf16.msra.mxu1 %v738_v29 }
  0x7f   :  { %388 = vmatprep.subr.bf16.mxu1 %v739_v30 }
  0x82   :  { %389 = vmatpush1.bf16.msra.mxu1 %v741_v31 }
  0x83   :  { %390 = vmatprep.subr.bf16.mxu1 %v742_v32 }
  0x86   :  { %391 = vmatpush1.bf16.msra.mxu1 %v744_v33 }
  0x87   :  { %392 = vmatprep.subr.bf16.mxu1 %v745_v34 }
  0x8a   :  { %393 = vmatpush1.bf16.msra.mxu1 %v747_v35 }
 0x122   :  { %v147_v55 = vpop.f32.mrb[0].mxu0 }
 0x123   :  { %v148_v56 = vadd.f32 %v147_v55, %v92_v53  ;;  %v149_v57 = vpop.f32.mrb[1].mxu0 }
 0x124   :  { %v150_v58 = vadd.f32 %v149_v57, %v96_v54  ;;  %v151_v59 = vpop.f32.mrb[2].mxu0 }
 0x125   :  { %v154_v60 = vmax.f32 %v148_v56, 0.0  ;;  %v152_v61 = vpop.f32.mrb[3].mxu0 }
 0x126   :  { %v155_v62 = vmax.f32 %v150_v58, 0.0 }
 0x127   :  { %v156_v1 = vpack.c.bf16 %v154_v60, %v154_v60 }
 0x128   :  { %v157_v63 = vpack.c.bf16 %v155_v62, %v155_v62 }
 0x12a   :  { %394 = vmatprep.mubr.bf16.mxu1 %v157_v63 }
 0x12b   :  { %395 = vmatmul.mubr.bf16.vlgmr.msra.gmra.mrb[0].mxu1 %v156_v1 }
 0x1fe   :  { %v396_v9 = vpop.f32.mrb[0].mxu1 }
 0x1ff   :  { %v397_v10 = vadd.f32 %v396_v9, %v195_v7  ;;  %v398_v11 = vpop.f32.mrb[1].mxu1 }
 0x200   :  { %v399_v12 = vadd.f32 %v398_v11, %v199_v8  ;;  %v400_v13 = vpop.f32.mrb[2].mxu1 }
 0x201   :  { %v403_v14 = vmax.f32 %v397_v10, 0.0  ;;  %v401_v15 = vpop.f32.mrb[3].mxu1 }
 0x202   :  { %v404_v16 = vmax.f32 %v399_v12, 0.0 }
 0x203   :  { %v405_v18 = vpack.c.bf16 %v403_v14, %v403_v14 }
 0x204   :  { %v406_v17 = vpack.c.bf16 %v404_v16, %v404_v16 }
 0x206   :  { %574 = vmatprep.mubr.bf16.mxu0 %v406_v17 }
 0x207   :  { %575 = vmatmul.mubr.bf16.vlgmr.msra.gmra.mrb[4].mxu0 %v405_v18 }
 0x2da   :  { %v681_v19 = vpop.f32.mrb[4].mxu0 }
 0x2db   :  { %v682_v21 = vpop.f32.mrb[5].mxu0 }
 0x2dc   :  { %v683_v22 = vadd.f32 %v682_v21, %v681_v19  ;;  %v684_v23 = vpop.f32.mrb[6].mxu0 }
 0x2dd   :  { %v685_v24 = vpop.f32.mrb[7].mxu0 }
 0x2de   :  { %v577_v25 = vadd.f32 %v683_v22, %v648_v20 }
 0x2e0   :  { %764 = vtanh.f32 %v577_v25 }
 0x2ea   :  { %v765_v29 = vpop.eup %764 }
 0x2eb   :  { %v585_v30 = vmul.f32 3.5, %v765_v29 }
 0x2ed   :  { %v586_v31 = vadd.f32 -1.5, %v585_v30 }
 0x2ef   :  { %v593_v32 = vsel %vm592_vm2, %v586_v31, %v577_v25 }
 0x2f0   :  { %v594_v33 = vpack.c.bf16 %v593_v32, %v593_v32 }
 0x2f2   :  { %595 = vst [vmem:[#allocation10] sm:$0xf] %v594_v33 }
 0x2f3   :  { %865 = shalt.err (!%p862_p8)
}
 0x2f4   :  { %s866_s19 = scalar_lea.hbm %s1027_s8, 64 }
 0x2f5   :  { %p867_p9 = scmp.ne.s32.totalorder %s1027_s8, %s866_s19  ;;  %p870_p10 = scmp.lt.u32.totalorder %s866_s19, %s1027_s8 }
 0x2f7   :  { %p872_p11 = pnand %p870_p10, %p867_p9 }
 0x2f9   :  { %875 = shalt.err (!%p872_p11)
}
 0x2fa   :  { %605 = dma.vmem_to_hbm [thread:$0]  %s603_s6, 64, %s1027_s8, [#allocation4]  }
 0x2fb   :  { %882 = dma.done.wait [#allocation4], 64  }
 0x2fc   :  { %883 = vsyncadd [#allocation4], 4294967232 }
 0x2fd   :  { %609 = vsyncpa [#allocation3], 1 }
 0x2fe   :  { %610 = vsyncpa [#allocation6], 1 }
 0x2ff   :  { %611 = vsyncpa [#allocation9], 1 }
 0x300   :  { %612 = vsyncpa [#allocation4], 1 }

</bundles_post_ra>
